<compile_context>
chip_gen: v5e
topology: v5e:2x2
jax: 0.10.0
libtpu: 0.0.40
codegen_flags: <defaults>
</compile_context>

<pallas_src>
import math
import functools

import jax
import jax.numpy as jnp
from jax.experimental import pallas as pl
from jax.experimental.pallas import tpu as pltpu

FREQ_DIM = 256      # TimeEmbedding.frequency_embedding_size default (128-aligned)
LANE = 128
SUBLANE = 8
MAX_PERIOD = 10000.0


def _round_up(n, m):
    return ((n + m - 1) // m) * m


# ----------------------------- Pallas kernel ------------------------------- #

def _fused_net_kernel(x_ref, t_ref, slab_ref, o_ref, tf_ref, *, pdims, offsets):
    """Whole network, statically unrolled over layers.

    slab layout per layer l (all row offsets 8-aligned, columns 0:pout used):
        rows [off           : off+pin           ]  W_fc  (pin,  pout)
        rows [off+pin       : off+pin+FREQ      ]  W1    (256,  pout)
        rows [off+pin+FREQ  : off+pin+FREQ+pout ]  W2    (pout, pout)
        rows [.. next 8 rows ]                     biases: b_fc, b1, b2 (rows 0..2)
    """
    num_layers = len(pdims) - 1
    half = FREQ_DIM // 2

    # --- in-kernel sinusoidal timestep embedding (EUP exp/sin/cos, ~free) ----
    t_col = t_ref[...]                                                # (TB, 1)
    lane = jax.lax.broadcasted_iota(jnp.int32, (1, half), 1).astype(jnp.float32)
    freqs = jnp.exp(lane * (-math.log(MAX_PERIOD)) / half)            # (1, half)
    arg = t_col * freqs                                               # (TB, half)
    tf_ref[:, :half] = jnp.sin(arg)
    tf_ref[:, half:] = jnp.cos(arg)

    x = x_ref[...]                                                    # (TB, pdims[0])

    for l in range(num_layers):                                       # unrolled
        pin, pout = pdims[l], pdims[l + 1]
        r0 = offsets[l]                 # W_fc rows
        r1 = r0 + pin                   # W1 rows
        r2 = r1 + FREQ_DIM              # W2 rows
        r3 = r2 + pout                  # 8-row bias block

        # fc(x)
        h = jnp.dot(x, slab_ref[r0:r1, :pout],
                    preferred_element_type=jnp.float32)

        # TimeEmbedding MLP: Linear -> SiLU -> Linear
        tf = tf_ref[...]                # per-layer re-read: short live range
        e = jnp.dot(tf, slab_ref[r1:r2, :pout],
                    preferred_element_type=jnp.float32)

        bias_blk = slab_ref[r3:r3 + SUBLANE, :pout]                   # (8, pout)
        h = h + bias_blk[0:1]
        e = e + bias_blk[1:2]
        e = e * jax.nn.sigmoid(e)                                     # SiLU
        emb = jnp.dot(e, slab_ref[r2:r3, :pout],
                      preferred_element_type=jnp.float32) + bias_blk[2:3]

        x = emb * h                                                   # gating
        if l < num_layers - 1:
            x = jnp.maximum(x, 0.0)                                   # ReLU

    o_ref[...] = x.astype(o_ref.dtype)


# ------------------------- one-time parameter packing ---------------------- #

def init_linear_block_params(key, dim_in, dim_out):
    ks = jax.random.split(key, 6)
    s = 0.05
    wfc = s * jax.random.normal(ks[0], (dim_in, dim_out), jnp.float32)
    bfc = s * jax.random.normal(ks[1], (dim_out,), jnp.float32)
    w1 = s * jax.random.normal(ks[2], (FREQ_DIM, dim_out), jnp.float32)
    b1 = s * jax.random.normal(ks[3], (dim_out,), jnp.float32)
    w2 = s * jax.random.normal(ks[4], (dim_out, dim_out), jnp.float32)
    b2 = s * jax.random.normal(ks[5], (dim_out,), jnp.float32)
    return (wfc, bfc, w1, b1, w2, b2)


def init_custom_net_params(key, dim_in, dim_out, dim_hids):
    dims = [dim_in] + list(dim_hids) + [dim_out]
    keys = jax.random.split(key, len(dims) - 1)
    return [init_linear_block_params(k, dims[i], dims[i + 1])
            for i, k in enumerate(keys)]


def pack_params(layer_params, dim_in):
    """Run ONCE at init: pack all layers into a single lane-dense f32 slab."""
    dims = [dim_in] + [p[0].shape[1] for p in layer_params]
    pdims = [_round_up(d, LANE) for d in dims]
    width = max(pdims[1:])

    offsets, rows = [], 0
    for l in range(len(layer_params)):
        offsets.append(rows)
        rows += pdims[l] + FREQ_DIM + pdims[l + 1] + SUBLANE   # +8-row bias block

    slab = jnp.zeros((rows, width), jnp.float32)
    for l, (wfc, bfc, w1, b1, w2, b2) in enumerate(layer_params):
        din, dout = wfc.shape
        pin, pout = pdims[l], pdims[l + 1]
        off = offsets[l]
        slab = slab.at[off:off + din, :dout].set(wfc)
        slab = slab.at[off + pin:off + pin + FREQ_DIM, :dout].set(w1)
        slab = slab.at[off + pin + FREQ_DIM:off + pin + FREQ_DIM + dout, :dout].set(w2)
        b = off + pin + FREQ_DIM + pout
        slab = slab.at[b + 0, :dout].set(bfc)
        slab = slab.at[b + 1, :dout].set(b1)
        slab = slab.at[b + 2, :dout].set(b2)

    meta = (tuple(dims), tuple(pdims), tuple(offsets))
    return slab, meta


# ------------------------------- forward ----------------------------------- #

def custom_net_forward(x, t, slab, *, meta):
    dims, pdims, offsets = meta
    B = x.shape[0]
    dim_in, dim_out = dims[0], dims[-1]

    # Batch tiling: up to 256-row tiles (fills the 256-wide MXU on v6e/v7x);
    # single step at toy batch sizes, "parallel" 1-D grid when batch grows.
    TB = min(_round_up(B, SUBLANE), 256)
    Bp = _round_up(B, TB)
    n_tiles = Bp // TB

    xp = jnp.zeros((Bp, pdims[0]), jnp.float32).at[:B, :dim_in].set(x)
    tp = jnp.zeros((Bp, 1), jnp.float32).at[:B, 0].set(t.astype(jnp.float32))

    in_specs = [
        pl.BlockSpec((TB, pdims[0]), lambda i: (i, 0)),
        pl.BlockSpec((TB, 1), lambda i: (i, 0)),
        pl.BlockSpec(slab.shape, lambda i: (0, 0)),   # constant index -> VMEM-resident
    ]
    out_spec = pl.BlockSpec((TB, pdims[-1]), lambda i: (i, 0))

    num_layers = len(pdims) - 1
    flops = 0
    for l in range(num_layers):
        pout = pdims[l + 1]
        flops += 2 * Bp * (pdims[l] * pout + FREQ_DIM * pout + pout * pout)
    transcendentals = Bp * (FREQ_DIM + sum(pdims[1:]))
    bytes_accessed = (xp.size + tp.size + slab.size + Bp * pdims[-1]) * 4
    cost = pl.CostEstimate(flops=flops, transcendentals=transcendentals,
                           bytes_accessed=bytes_accessed)

    kernel = functools.partial(_fused_net_kernel,
                               pdims=tuple(pdims), offsets=tuple(offsets))

    out_padded = pl.pallas_call(
        kernel,
        out_shape=jax.ShapeDtypeStruct((Bp, pdims[-1]), jnp.float32),
        grid=(n_tiles,),
        in_specs=in_specs,
        out_specs=out_spec,
        scratch_shapes=[pltpu.VMEM((TB, FREQ_DIM), jnp.float32)],
        compiler_params=pltpu.CompilerParams(dimension_semantics=("parallel",)),
        cost_estimate=cost,
    )(xp, tp, slab)

    return out_padded[:B, :dim_out]


# -------------------------- pure-JAX reference ------------------------------ #

def timestep_embedding_ref(t, embedding_dim=FREQ_DIM, max_period=MAX_PERIOD):
    half = embedding_dim // 2
    exponent = -math.log(max_period) * jnp.arange(half, dtype=jnp.float32) / half
    arg = t.astype(jnp.float32)[:, None] * jnp.exp(exponent)[None, :]
    return jnp.concatenate([jnp.sin(arg), jnp.cos(arg)], axis=-1)


def custom_net_reference(x, t, layer_params):
    t_freq = timestep_embedding_ref(t)
    n = len(layer_params)
    for i, (wfc, bfc, w1, b1, w2, b2) in enumerate(layer_params):
        h = x @ wfc + bfc[None, :]
        e = t_freq @ w1 + b1[None, :]
        e = e * jax.nn.sigmoid(e)
        emb = e @ w2 + b2[None, :]
        x = emb * h
        if i < n - 1:
            x = jnp.maximum(x, 0.0)
    return x


# --------------------------------- main ------------------------------------ #

if __name__ == "__main__":
    dim_in, dim_out = 16, 8
    dim_hids = [32, 32]
    num_timesteps = 1000
    batch = 8

    key = jax.random.PRNGKey(0)
    k_params, k_x, k_t = jax.random.split(key, 3)

    layer_params = init_custom_net_params(k_params, dim_in, dim_out, dim_hids)
    x = jax.random.normal(k_x, (batch, dim_in), jnp.float32)
    t = jax.random.randint(k_t, (batch,), 0, num_timesteps).astype(jnp.float32)

    # One-time packing outside jit: jitted forward is just [pad] -> pallas -> slice.
    slab, meta = pack_params(layer_params, dim_in)

    fwd = jax.jit(functools.partial(custom_net_forward, meta=meta))
    out = jax.block_until_ready(fwd(x, t, slab))

    ref = jax.block_until_ready(custom_net_reference(x, t, layer_params))
    assert out.shape == (batch, dim_out), out.shape
    assert jnp.allclose(out, ref, atol=5e-4, rtol=1e-3), "mismatch vs reference"

    print("KERNEL_OK")
</pallas_src>

<mosaic_0001>
module attributes {stable_mosaic.version = 11 : i64} {
  func.func @_fused_net_kernel(%arg0: i32, %arg1: memref<8x128xf32, #tpu.memory_space<vmem>>, %arg2: memref<8x1xf32, #tpu.memory_space<vmem>>, %arg3: memref<1560x128xf32, #tpu.memory_space<vmem>>, %arg4: memref<8x128xf32, #tpu.memory_space<vmem>>, %arg5: memref<8x256xf32, #tpu.memory_space<vmem>>) attributes {dimension_semantics = [#tpu.dimension_semantics<parallel>], iteration_bounds = array<i64: 1>, scalar_prefetch = 0 : i64, scratch_operands = 1 : i64, tpu.core_type = #tpu.core_type<tc>, window_params = [{transform_indices = @transform_0, window_bounds = array<i64: 8, 128>}, {transform_indices = @transform_1, window_bounds = array<i64: 8, 1>}, {pipeline_mode = #tpu.pipeline_mode<synchronous>, transform_indices = @transform_2, window_bounds = array<i64: 1560, 128>}, {transform_indices = @transform_3, window_bounds = array<i64: 8, 128>}]} {
    %c0 = arith.constant 0 : index
    %c0_0 = arith.constant 0 : index
    %0 = vector.load %arg2[%c0, %c0_0] : memref<8x1xf32, #tpu.memory_space<vmem>>, vector<8x1xf32>
    %1 = tpu.iota {dimensions = array<i32: 1>} : vector<1x128xi32>
    %2 = arith.sitofp %1 : vector<1x128xi32> to vector<1x128xf32>
    %cst = arith.constant -9.21034049 : f32
    %3 = vector.broadcast %cst : f32 to vector<1x128xf32>
    %4 = arith.mulf %2, %3 : vector<1x128xf32>
    %cst_1 = arith.constant 1.280000e+02 : f32
    %5 = vector.broadcast %cst_1 : f32 to vector<1x128xf32>
    %6 = arith.divf %4, %5 : vector<1x128xf32>
    %7 = math.exp %6 : vector<1x128xf32>
    %8 = vector.broadcast %0 : vector<8x1xf32> to vector<8x128xf32>
    %9 = vector.broadcast %7 : vector<1x128xf32> to vector<8x128xf32>
    %10 = arith.mulf %8, %9 : vector<8x128xf32>
    %11 = math.sin %10 : vector<8x128xf32>
    %c0_2 = arith.constant 0 : index
    %c0_3 = arith.constant 0 : index
    %12 = vector.load %arg5[%c0_2, %c0_3] : memref<8x256xf32, #tpu.memory_space<vmem>>, vector<8x128xf32>
    tpu.vector_store %arg5[%c0_2, %c0_3], %11 {strides = array<i32>} : memref<8x256xf32, #tpu.memory_space<vmem>>, vector<8x128xf32>,
    %13 = math.cos %10 : vector<8x128xf32>
    %c0_4 = arith.constant 0 : index
    %c128 = arith.constant 128 : index
    %14 = vector.load %arg5[%c0_4, %c128] : memref<8x256xf32, #tpu.memory_space<vmem>>, vector<8x128xf32>
    tpu.vector_store %arg5[%c0_4, %c128], %13 {strides = array<i32>} : memref<8x256xf32, #tpu.memory_space<vmem>>, vector<8x128xf32>,
    %c0_5 = arith.constant 0 : index
    %c0_6 = arith.constant 0 : index
    %15 = vector.load %arg1[%c0_5, %c0_6] : memref<8x128xf32, #tpu.memory_space<vmem>>, vector<8x128xf32>
    %c0_7 = arith.constant 0 : index
    %c0_8 = arith.constant 0 : index
    %16 = vector.load %arg3[%c0_7, %c0_8] : memref<1560x128xf32, #tpu.memory_space<vmem>>, vector<128x128xf32>
    %cst_9 = arith.constant dense<0.000000e+00> : vector<8x128xf32>
    %17 = tpu.matmul %15, %16, %cst_9 {dimension_numbers = #tpu.dot_dimension_numbers<[1], [0], [0], [1], [0, 0, 1, 1], [], []>} : vector<8x128xf32>, vector<128x128xf32>, vector<8x128xf32> -> vector<8x128xf32>
    %c0_10 = arith.constant 0 : index
    %c0_11 = arith.constant 0 : index
    %18 = vector.load %arg5[%c0_10, %c0_11] : memref<8x256xf32, #tpu.memory_space<vmem>>, vector<8x256xf32>
    %c128_12 = arith.constant 128 : index
    %c0_13 = arith.constant 0 : index
    %19 = vector.load %arg3[%c128_12, %c0_13] : memref<1560x128xf32, #tpu.memory_space<vmem>>, vector<256x128xf32>
    %cst_14 = arith.constant dense<0.000000e+00> : vector<8x128xf32>
    %20 = tpu.matmul %18, %19, %cst_14 {dimension_numbers = #tpu.dot_dimension_numbers<[1], [0], [0], [1], [0, 0, 1, 1], [], []>} : vector<8x256xf32>, vector<256x128xf32>, vector<8x128xf32> -> vector<8x128xf32>
    %c512 = arith.constant 512 : index
    %c0_15 = arith.constant 0 : index
    %21 = vector.load %arg3[%c512, %c0_15] : memref<1560x128xf32, #tpu.memory_space<vmem>>, vector<8x128xf32>
    %22 = vector.extract_strided_slice %21 {offsets = [0, 0], sizes = [1, 128], strides = [1, 1]} : vector<8x128xf32> to vector<1x128xf32>
    %23 = vector.broadcast %22 : vector<1x128xf32> to vector<8x128xf32>
    %24 = arith.addf %17, %23 : vector<8x128xf32>
    %25 = vector.extract_strided_slice %21 {offsets = [1, 0], sizes = [1, 128], strides = [1, 1]} : vector<8x128xf32> to vector<1x128xf32>
    %26 = vector.broadcast %25 : vector<1x128xf32> to vector<8x128xf32>
    %27 = arith.addf %20, %26 : vector<8x128xf32>
    %28 = arith.negf %27 : vector<8x128xf32>
    %29 = math.exp %28 : vector<8x128xf32>
    %cst_16 = arith.constant 1.000000e+00 : f32
    %30 = vector.broadcast %cst_16 : f32 to vector<8x128xf32>
    %31 = arith.addf %30, %29 : vector<8x128xf32>
    %32 = arith.divf %30, %31 : vector<8x128xf32>
    %33 = arith.mulf %27, %32 : vector<8x128xf32>
    %c384 = arith.constant 384 : index
    %c0_17 = arith.constant 0 : index
    %34 = vector.load %arg3[%c384, %c0_17] : memref<1560x128xf32, #tpu.memory_space<vmem>>, vector<128x128xf32>
    %cst_18 = arith.constant dense<0.000000e+00> : vector<8x128xf32>
    %35 = tpu.matmul %33, %34, %cst_18 {dimension_numbers = #tpu.dot_dimension_numbers<[1], [0], [0], [1], [0, 0, 1, 1], [], []>} : vector<8x128xf32>, vector<128x128xf32>, vector<8x128xf32> -> vector<8x128xf32>
    %36 = vector.extract_strided_slice %21 {offsets = [2, 0], sizes = [1, 128], strides = [1, 1]} : vector<8x128xf32> to vector<1x128xf32>
    %37 = vector.broadcast %36 : vector<1x128xf32> to vector<8x128xf32>
    %38 = arith.addf %35, %37 : vector<8x128xf32>
    %39 = arith.mulf %38, %24 : vector<8x128xf32>
    %cst_19 = arith.constant 0.000000e+00 : f32
    %40 = vector.broadcast %cst_19 : f32 to vector<8x128xf32>
    %41 = arith.maximumf %39, %40 : vector<8x128xf32>
    %c520 = arith.constant 520 : index
    %c0_20 = arith.constant 0 : index
    %42 = vector.load %arg3[%c520, %c0_20] : memref<1560x128xf32, #tpu.memory_space<vmem>>, vector<128x128xf32>
    %cst_21 = arith.constant dense<0.000000e+00> : vector<8x128xf32>
    %43 = tpu.matmul %41, %42, %cst_21 {dimension_numbers = #tpu.dot_dimension_numbers<[1], [0], [0], [1], [0, 0, 1, 1], [], []>} : vector<8x128xf32>, vector<128x128xf32>, vector<8x128xf32> -> vector<8x128xf32>
    %c0_22 = arith.constant 0 : index
    %c0_23 = arith.constant 0 : index
    %44 = vector.load %arg5[%c0_22, %c0_23] : memref<8x256xf32, #tpu.memory_space<vmem>>, vector<8x256xf32>
    %c648 = arith.constant 648 : index
    %c0_24 = arith.constant 0 : index
    %45 = vector.load %arg3[%c648, %c0_24] : memref<1560x128xf32, #tpu.memory_space<vmem>>, vector<256x128xf32>
    %cst_25 = arith.constant dense<0.000000e+00> : vector<8x128xf32>
    %46 = tpu.matmul %44, %45, %cst_25 {dimension_numbers = #tpu.dot_dimension_numbers<[1], [0], [0], [1], [0, 0, 1, 1], [], []>} : vector<8x256xf32>, vector<256x128xf32>, vector<8x128xf32> -> vector<8x128xf32>
    %c1032 = arith.constant 1032 : index
    %c0_26 = arith.constant 0 : index
    %47 = vector.load %arg3[%c1032, %c0_26] : memref<1560x128xf32, #tpu.memory_space<vmem>>, vector<8x128xf32>
    %48 = vector.extract_strided_slice %47 {offsets = [0, 0], sizes = [1, 128], strides = [1, 1]} : vector<8x128xf32> to vector<1x128xf32>
    %49 = vector.broadcast %48 : vector<1x128xf32> to vector<8x128xf32>
    %50 = arith.addf %43, %49 : vector<8x128xf32>
    %51 = vector.extract_strided_slice %47 {offsets = [1, 0], sizes = [1, 128], strides = [1, 1]} : vector<8x128xf32> to vector<1x128xf32>
    %52 = vector.broadcast %51 : vector<1x128xf32> to vector<8x128xf32>
    %53 = arith.addf %46, %52 : vector<8x128xf32>
    %54 = arith.negf %53 : vector<8x128xf32>
    %55 = math.exp %54 : vector<8x128xf32>
    %cst_27 = arith.constant 1.000000e+00 : f32
    %56 = vector.broadcast %cst_27 : f32 to vector<8x128xf32>
    %57 = arith.addf %56, %55 : vector<8x128xf32>
    %58 = arith.divf %56, %57 : vector<8x128xf32>
    %59 = arith.mulf %53, %58 : vector<8x128xf32>
    %c904 = arith.constant 904 : index
    %c0_28 = arith.constant 0 : index
    %60 = vector.load %arg3[%c904, %c0_28] : memref<1560x128xf32, #tpu.memory_space<vmem>>, vector<128x128xf32>
    %cst_29 = arith.constant dense<0.000000e+00> : vector<8x128xf32>
    %61 = tpu.matmul %59, %60, %cst_29 {dimension_numbers = #tpu.dot_dimension_numbers<[1], [0], [0], [1], [0, 0, 1, 1], [], []>} : vector<8x128xf32>, vector<128x128xf32>, vector<8x128xf32> -> vector<8x128xf32>
    %62 = vector.extract_strided_slice %47 {offsets = [2, 0], sizes = [1, 128], strides = [1, 1]} : vector<8x128xf32> to vector<1x128xf32>
    %63 = vector.broadcast %62 : vector<1x128xf32> to vector<8x128xf32>
    %64 = arith.addf %61, %63 : vector<8x128xf32>
    %65 = arith.mulf %64, %50 : vector<8x128xf32>
    %cst_30 = arith.constant 0.000000e+00 : f32
    %66 = vector.broadcast %cst_30 : f32 to vector<8x128xf32>
    %67 = arith.maximumf %65, %66 : vector<8x128xf32>
    %c1040 = arith.constant 1040 : index
    %c0_31 = arith.constant 0 : index
    %68 = vector.load %arg3[%c1040, %c0_31] : memref<1560x128xf32, #tpu.memory_space<vmem>>, vector<128x128xf32>
    %cst_32 = arith.constant dense<0.000000e+00> : vector<8x128xf32>
    %69 = tpu.matmul %67, %68, %cst_32 {dimension_numbers = #tpu.dot_dimension_numbers<[1], [0], [0], [1], [0, 0, 1, 1], [], []>} : vector<8x128xf32>, vector<128x128xf32>, vector<8x128xf32> -> vector<8x128xf32>
    %c0_33 = arith.constant 0 : index
    %c0_34 = arith.constant 0 : index
    %70 = vector.load %arg5[%c0_33, %c0_34] : memref<8x256xf32, #tpu.memory_space<vmem>>, vector<8x256xf32>
    %c1168 = arith.constant 1168 : index
    %c0_35 = arith.constant 0 : index
    %71 = vector.load %arg3[%c1168, %c0_35] : memref<1560x128xf32, #tpu.memory_space<vmem>>, vector<256x128xf32>
    %cst_36 = arith.constant dense<0.000000e+00> : vector<8x128xf32>
    %72 = tpu.matmul %70, %71, %cst_36 {dimension_numbers = #tpu.dot_dimension_numbers<[1], [0], [0], [1], [0, 0, 1, 1], [], []>} : vector<8x256xf32>, vector<256x128xf32>, vector<8x128xf32> -> vector<8x128xf32>
    %c1552 = arith.constant 1552 : index
    %c0_37 = arith.constant 0 : index
    %73 = vector.load %arg3[%c1552, %c0_37] : memref<1560x128xf32, #tpu.memory_space<vmem>>, vector<8x128xf32>
    %74 = vector.extract_strided_slice %73 {offsets = [0, 0], sizes = [1, 128], strides = [1, 1]} : vector<8x128xf32> to vector<1x128xf32>
    %75 = vector.broadcast %74 : vector<1x128xf32> to vector<8x128xf32>
    %76 = arith.addf %69, %75 : vector<8x128xf32>
    %77 = vector.extract_strided_slice %73 {offsets = [1, 0], sizes = [1, 128], strides = [1, 1]} : vector<8x128xf32> to vector<1x128xf32>
    %78 = vector.broadcast %77 : vector<1x128xf32> to vector<8x128xf32>
    %79 = arith.addf %72, %78 : vector<8x128xf32>
    %80 = arith.negf %79 : vector<8x128xf32>
    %81 = math.exp %80 : vector<8x128xf32>
    %cst_38 = arith.constant 1.000000e+00 : f32
    %82 = vector.broadcast %cst_38 : f32 to vector<8x128xf32>
    %83 = arith.addf %82, %81 : vector<8x128xf32>
    %84 = arith.divf %82, %83 : vector<8x128xf32>
    %85 = arith.mulf %79, %84 : vector<8x128xf32>
    %c1424 = arith.constant 1424 : index
    %c0_39 = arith.constant 0 : index
    %86 = vector.load %arg3[%c1424, %c0_39] : memref<1560x128xf32, #tpu.memory_space<vmem>>, vector<128x128xf32>
    %cst_40 = arith.constant dense<0.000000e+00> : vector<8x128xf32>
    %87 = tpu.matmul %85, %86, %cst_40 {dimension_numbers = #tpu.dot_dimension_numbers<[1], [0], [0], [1], [0, 0, 1, 1], [], []>} : vector<8x128xf32>, vector<128x128xf32>, vector<8x128xf32> -> vector<8x128xf32>
    %88 = vector.extract_strided_slice %73 {offsets = [2, 0], sizes = [1, 128], strides = [1, 1]} : vector<8x128xf32> to vector<1x128xf32>
    %89 = vector.broadcast %88 : vector<1x128xf32> to vector<8x128xf32>
    %90 = arith.addf %87, %89 : vector<8x128xf32>
    %91 = arith.mulf %90, %76 : vector<8x128xf32>
    %c0_41 = arith.constant 0 : index
    %c0_42 = arith.constant 0 : index
    %92 = vector.load %arg4[%c0_41, %c0_42] : memref<8x128xf32, #tpu.memory_space<vmem>>, vector<8x128xf32>
    tpu.vector_store %arg4[%c0_41, %c0_42], %91 {strides = array<i32>} : memref<8x128xf32, #tpu.memory_space<vmem>>, vector<8x128xf32>,
    return
  }
  func.func @transform_0(%arg0: i32) -> (i32, i32) {
    %c0_i32 = arith.constant 0 : i32
    %c0_i32_0 = arith.constant 0 : i32
    return %arg0, %c0_i32 : i32, i32
  }
  func.func @transform_1(%arg0: i32) -> (i32, i32) {
    %c0_i32 = arith.constant 0 : i32
    %c0_i32_0 = arith.constant 0 : i32
    return %arg0, %c0_i32 : i32, i32
  }
  func.func @transform_2(%arg0: i32) -> (i32, i32) {
    %c0_i32 = arith.constant 0 : i32
    %c0_i32_0 = arith.constant 0 : i32
    %c0_i32_1 = arith.constant 0 : i32
    return %c0_i32, %c0_i32_0 : i32, i32
  }
  func.func @transform_3(%arg0: i32) -> (i32, i32) {
    %c0_i32 = arith.constant 0 : i32
    %c0_i32_0 = arith.constant 0 : i32
    return %arg0, %c0_i32 : i32, i32
  }
}

</mosaic_0001>

<bundles_post_ra>
// kernel: custom_net_forward.1
= control target key start
LH: loop header
LB: loop body
LE: loop exit
PB: predicated region body
PF: predicated region fallthrough
CT: control target
= control target key end

     0   :  { %8 = vsyncpa [#allocation4], 0  ;;  %s1131_s0 = inlined_call_operand.vmem [shape: f32[8,128], index: 0, kind: input, shape index: {}]   ;;  %s1132_s1 = inlined_call_operand.vmem [shape: f32[8,1], index: 1, kind: input, shape index: {}]   ;;  %s1133_s2 = inlined_call_operand.hbm [shape: f32[1560,128], index: 2, kind: input, shape index: {}]   ;;  %s1134_s3 = inlined_call_operand.hbm [shape: f32[8,128], index: 3, kind: output, shape index: {}]  }
   0x1   :  { %9 = vsyncpa [#allocation5], 0  ;;  %s18_s14 = sshll.u32 %s1133_s2, 4  ;;  %s983_s15 = smov [#allocation3]   ;;  %s19_s14 = int_to_ptr.hbm [resolvable:$true] %s18_s14 }
   0x2   :  { %s20_s16 = sshll.u32 %s983_s15, 4  ;;  %s984_s17 = smov 128   ;;  %s21_s16 = int_to_ptr.vmem [resolvable:$true] %s20_s16 }
   0x3   :  { %s985_s18 = smov 8  }
   0x4   :  { %26 = dma.hbm_to_vmem [thread:$0]  %s19_s14, 24960, %s21_s16, [#allocation4], %s984_s17, %s984_s17, %s985_s18  }
   0x5   :  { %979 = dma.done.wait [#allocation4], 24960  }
   0x6   :  { %980 = vsyncadd [#allocation4], 4294942336  ;;  %v986_v0 = vmov 0   ;;  %v31_v1 = vld [vmem:[%s1132_s1] sm:$0xff]  ;;  %v987_v2 = vmov 128.0   ;;  %v32_v5 = vlaneseq  ;;  %v397_v16 = vld [vmem:[#allocation3 + $0xf8] sm:$0xff] }
   0x7   :  { %914 = vset.pattern.permute.xlu0 %v986_v0  ;;  %915 = vrcp.f32 %v987_v2  ;;  %v413_v17 = vld [vmem:[#allocation3 + $0x178] sm:$0xff]  ;;  %v396_v18 = vld [vmem:[#allocation3 + $0xf0] sm:$0xff]  ;;  %437 = vmatpush.msra.mxu1 %v397_v16  ;;  %v395_v22 = vld [vmem:[#allocation3 + $0xe8] sm:$0xff]  ;;  %v988_v49 = vmov 683565275   ;;  %s883_s24 = sshll.u32 %s1134_s3, 4  ;;  %s884_s24 = int_to_ptr.hbm [resolvable:$true] %s883_s24 }
   0x8   :  { %48 = vperm.xlu0 %914, %v31_v1   ;;  %v33_v7 = vand.u32 127, %v32_v5  ;;  %457 = vmatpush.msra.mxu2 %v413_v17  ;;  %v412_v20 = vld [vmem:[#allocation3 + $0x170] sm:$0xff]  ;;  %v411_v23 = vld [vmem:[#allocation3 + $0x168] sm:$0xff]  ;;  %v394_v25 = vld [vmem:[#allocation3 + $0xe0] sm:$0xff]  ;;  %v989_v51 = vmov 2475754826  }
   0x9   :  { %438 = vmatpush.msra.mxu1 %v396_v18  ;;  %v410_v26 = vld [vmem:[#allocation3 + $0x160] sm:$0xff]  ;;  %v393_v28 = vld [vmem:[#allocation3 + $0xd8] sm:$0xff]  ;;  %v392_v32 = vld [vmem:[#allocation3 + $0xd0] sm:$0xff]  ;;  %v990_v53 = vmov 2131351028  }
   0xa   :  { %v34_v9 = vcvt.s32.f32 %v33_v7  ;;  %458 = vmatpush.msra.mxu2 %v412_v20  ;;  %v409_v29 = vld [vmem:[#allocation3 + $0x158] sm:$0xff]  ;;  %v408_v33 = vld [vmem:[#allocation3 + $0x150] sm:$0xff]  ;;  %v391_v35 = vld [vmem:[#allocation3 + $0xc8] sm:$0xff]  ;;  %v991_v57 = vmov 2102212464  }
   0xb   :  { %439 = vmatpush.msra.mxu1 %v395_v22  ;;  %v407_v36 = vld [vmem:[#allocation3 + $0x148] sm:$0xff]  ;;  %v390_v38 = vld [vmem:[#allocation3 + $0xc0] sm:$0xff]  ;;  %v389_v42 = vld [vmem:[#allocation3 + $0xb8] sm:$0xff]  ;;  %v992_v62 = vmov 920167782  }
   0xc   :  { %v35_v11 = vmul.f32 -9.2103405, %v34_v9  ;;  %459 = vmatpush.msra.mxu2 %v411_v23  ;;  %v406_v39 = vld [vmem:[#allocation3 + $0x140] sm:$0xff]  ;;  %v405_v43 = vld [vmem:[#allocation3 + $0x138] sm:$0xff]  ;;  %v388_v46 = vld [vmem:[#allocation3 + $0xb0] sm:$0xff] }
   0xd   :  { %v916_v3 = vpop.eup %915  ;;  %440 = vmatpush.msra.mxu1 %v394_v25  ;;  %v404_v47 = vld [vmem:[#allocation3 + $0x130] sm:$0xff]  ;;  %v387_v60 = vld [vmem:[#allocation3 + $0xa8] sm:$0xff]  ;;  %v993_v2 = vmov 1326507024   ;;  %v386_v7 = vld [vmem:[#allocation3 + $0xa0] sm:$0xff] }
   0xe   :  { %v37_v4 = vmul.f32 128.0, %v916_v3  ;;  %vm41_vm0 = vweird.f32 %v916_v3  ;;  %460 = vmatpush.msra.mxu2 %v410_v26  ;;  %v403_v61 = vld [vmem:[#allocation3 + $0x128] sm:$0xff]  ;;  %v384_v20 = vld [vmem:[#allocation3 + $0x90] sm:$0xff] }
   0xf   :  { %441 = vmatpush.msra.mxu1 %v393_v28  ;;  %v400_v22 = vld [vmem:[#allocation3 + $0x110] sm:$0xff] }
  0x10   :  { %v38_v6 = vsub.f32 1.0, %v37_v4  ;;  %461 = vmatpush.msra.mxu2 %v409_v29 }
  0x11   :  { %442 = vmatpush.msra.mxu1 %v392_v32  ;;  %v399_v32 = vld [vmem:[#allocation3 + $0x108] sm:$0xff] }
  0x12   :  { %v39_v8 = vmul.f32 %v916_v3, %v38_v6  ;;  %462 = vmatpush.msra.mxu2 %v408_v33 }
  0x13   :  { %443 = vmatpush.msra.mxu1 %v391_v35 }
  0x14   :  { %v40_v10 = vadd.f32 %v916_v3, %v39_v8  ;;  %463 = vmatpush.msra.mxu2 %v407_v36  ;;  %v402_v8 = vld [vmem:[#allocation3 + $0x120] sm:$0xff] }
  0x15   :  { %444 = vmatpush.msra.mxu1 %v390_v38  ;;  %v382_v36 = vld [vmem:[#allocation3 + $0x80] sm:$0xff] }
  0x16   :  { %v42_v12 = vsel %vm41_vm0, %v916_v3, %v40_v10  ;;  %464 = vmatpush.msra.mxu2 %v406_v39  ;;  %v567_v38 = vld [vmem:[#allocation3 + $0x300] sm:$0xff] }
  0x17   :  { %v43_v13 = vmul.f32 %v42_v12, %v35_v11  ;;  %445 = vmatpush.msra.mxu1 %v389_v42  ;;  %v583_v39 = vld [vmem:[#allocation3 + $0x380] sm:$0xff] }
  0x18   :  { %465 = vmatpush.msra.mxu2 %v405_v43 }
  0x19   :  { %v44_v14 = vmul.f32 1.442695, %v43_v13  ;;  %446 = vmatpush.msra.mxu1 %v388_v46 }
  0x1a   :  { %466 = vmatpush.msra.mxu2 %v404_v47  ;;  %v566_v47 = vld [vmem:[#allocation3 + $0x2f8] sm:$0xff] }
  0x1b   :  { %917 = vpow2.f32 %v44_v14  ;;  %447 = vmatpush.msra.mxu1 %v387_v60  ;;  %v385_v14 = vld [vmem:[#allocation3 + $0x98] sm:$0xff] }
  0x1c   :  { %467 = vmatpush.msra.mxu2 %v403_v61 }
  0x1d   :  { %448 = vmatpush.msra.mxu1 %v386_v7 }
  0x1e   :  { %468 = vmatpush.msra.mxu2 %v402_v8 }
  0x1f   :  { %449 = vmatpush.msra.mxu1 %v385_v14 }
  0x21   :  { %v918_v15 = vpop.eup %917  ;;  %450 = vmatpush.msra.mxu1 %v384_v20 }
  0x7a   :  { %v49_v19 = vpop.permute.xlu0 %48 }
  0x7b   :  { %v1022_v21 = vmul.f32 %v918_v15, %v49_v19  ;;  %v401_v15 = vld [vmem:[#allocation3 + $0x118] sm:$0xff] }
  0x7c   :  { %469 = vmatpush.msra.mxu2 %v401_v15 }
  0x7d   :  { %v55_v24 = vand.u32 2139095040, %v1022_v21  ;;  %v52_v30 = vand.u32 2147483647, %v1022_v21  ;;  %vm54_vm13 = vcmp.lt.s32.totalorder %v1022_v21, 0 }
  0x7e   :  { %470 = vmatpush.msra.mxu2 %v400_v22 }
  0x7f   :  { %v56_v27 = vshrl.u32 %v55_v24, 23  ;;  %v59_v37 = vand.u32 8388607, %v52_v30  ;;  %vm53_vm14 = vcmp.le.f32.partialorder %v52_v30, 0.7853982 }
  0x80   :  { %471 = vmatpush.msra.mxu2 %v399_v32 }
  0x81   :  { %v893_v31 = vadd.s32 4294967169, %v56_v27  ;;  %v60_v44 = vor.u32 8388608, %v59_v37  ;;  %v398_v37 = vld [vmem:[#allocation3 + $0x100] sm:$0xff] }
  0x82   :  { %472 = vmatpush.msra.mxu2 %v398_v37  ;;  %v573_v37 = vld [vmem:[#allocation3 + $0x330] sm:$0xff] }
  0x83   :  { %v62_v34 = vadd.s32 1, %v893_v31  ;;  %v1045_v11 = vshll.u32 %v60_v44, 8  ;;  %v383_v31 = vld [vmem:[#allocation3 + $0x88] sm:$0xff] }
  0x84   :  { %451 = vmatpush.msra.mxu1 %v383_v31  ;;  %627 = vmatpush.msrb.mxu2 %v583_v39  ;;  %v575_v31 = vld [vmem:[#allocation3 + $0x340] sm:$0xff]  ;;  %v556_v39 = vld [vmem:[#allocation3 + $0x2a8] sm:$0xff] }
  0x85   :  { %vm63_vm1 = vcmp.gt.s32.totalorder %v62_v34, 0  ;;  %v101_v25 = vand.u32 65535, %v1045_v11  ;;  %v102_v33 = vshrl.u32 %v1045_v11, 16 }
  0x86   :  { %v64_v40 = vsel %vm63_vm1, %v62_v34, 0  ;;  %452 = vmatpush.msra.mxu1 %v382_v36  ;;  %v557_v36 = vld [vmem:[#allocation3 + $0x2b0] sm:$0xff] }
  0x87   :  { %v66_v41 = vand.u32 31, %v64_v40  ;;  %v1030_v48 = vshrl.u32 %v64_v40, 5 }
  0x88   :  { %607 = vmatpush.msrb.mxu1 %v567_v38 }
  0x89   :  { %v1028_v45 = vsub.s32 32, %v66_v41  ;;  %v69_v50 = vshll.u32 %v988_v49, %v66_v41  ;;  %v72_v52 = vshll.u32 %v989_v51, %v66_v41  ;;  %v75_v54 = vshll.u32 %v990_v53, %v66_v41 }
  0x8a   :  { %v78_v59 = vshll.u32 %v991_v57, %v66_v41  ;;  %v81_v1 = vshll.u32 %v992_v62, %v66_v41  ;;  %vm84_vm2 = vcmp.lt.s32.totalorder %v1030_v48, 1  ;;  %vm87_vm3 = vcmp.lt.s32.totalorder %v1030_v48, 4  ;;  %608 = vmatpush.msrb.mxu1 %v566_v47 }
  0x8b   :  { %v70_v55 = vshrl.u32 %v989_v51, %v1028_v45  ;;  %v73_v56 = vshrl.u32 %v990_v53, %v1028_v45  ;;  %v76_v58 = vshrl.u32 %v991_v57, %v1028_v45  ;;  %v79_v63 = vshrl.u32 %v992_v62, %v1028_v45 }
  0x8c   :  { %v82_v3 = vshrl.u32 %v993_v2, %v1028_v45  ;;  %vm86_vm4 = vcmp.lt.s32.totalorder %v1030_v48, 3  ;;  %vm85_vm5 = vcmp.lt.s32.totalorder %v1030_v48, 2  ;;  %v68_v7 = vshrl.u32 %v988_v49, %v1028_v45 }
  0x8d   :  { %v1038_v4 = vor.u32 %v70_v55, %v69_v50  ;;  %v1040_v5 = vor.u32 %v73_v56, %v72_v52  ;;  %v1042_v6 = vor.u32 %v76_v58, %v75_v54  ;;  %v80_v9 = vor.u32 %v79_v63, %v78_v59  ;;  %v582_v50 = vld [vmem:[#allocation3 + $0x378] sm:$0xff]  ;;  %v565_v55 = vld [vmem:[#allocation3 + $0x2f0] sm:$0xff]  ;;  %v564_v63 = vld [vmem:[#allocation3 + $0x2e8] sm:$0xff] }
  0x8e   :  { %v83_v10 = vor.u32 %v82_v3, %v81_v1  ;;  %v581_v56 = vld [vmem:[#allocation3 + $0x370] sm:$0xff]  ;;  %628 = vmatpush.msrb.mxu2 %v582_v50  ;;  %v580_v1 = vld [vmem:[#allocation3 + $0x368] sm:$0xff]  ;;  %609 = vmatpush.msrb.mxu1 %v565_v55 }
  0x8f   :  { %v92_v12 = vsel %vm84_vm2, %v1038_v4, %v1040_v5  ;;  %v96_v13 = vsel %vm84_vm2, %v1040_v5, %v1042_v6  ;;  %v93_v16 = vsel %vm87_vm3, %v80_v9, 920167782  ;;  %v89_v62 = vsel %vm87_vm3, %v1042_v6, 2102212464  ;;  %v553_v50 = vld [vmem:[#allocation3 + $0x290] sm:$0xff] }
  0x90   :  { %v97_v17 = vsel %vm87_vm3, %v83_v10, 1326507024  ;;  %v94_v18 = vsel %vm86_vm4, %v1042_v6, %v93_v16  ;;  %629 = vmatpush.msrb.mxu2 %v581_v56  ;;  %v88_v6 = vsel %vm84_vm2, %v68_v7, %v1038_v4  ;;  %v90_v16 = vsel %vm86_vm4, %v1040_v5, %v89_v62  ;;  %610 = vmatpush.msrb.mxu1 %v564_v63  ;;  %v561_v4 = vld [vmem:[#allocation3 + $0x2d0] sm:$0xff]  ;;  %v560_v5 = vld [vmem:[#allocation3 + $0x2c8] sm:$0xff] }
  0x91   :  { %v98_v19 = vsel %vm86_vm4, %v80_v9, %v97_v17  ;;  %v95_v23 = vsel %vm85_vm5, %v92_v12, %v94_v18  ;;  %v563_v12 = vld [vmem:[#allocation3 + $0x2e0] sm:$0xff]  ;;  %v562_v17 = vld [vmem:[#allocation3 + $0x2d8] sm:$0xff] }
  0x92   :  { %v99_v24 = vsel %vm85_vm5, %v96_v13, %v98_v19  ;;  %v125_v28 = vand.u32 65535, %v95_v23  ;;  %v126_v29 = vshrl.u32 %v95_v23, 16  ;;  %v579_v13 = vld [vmem:[#allocation3 + $0x360] sm:$0xff]  ;;  %630 = vmatpush.msrb.mxu2 %v580_v1  ;;  %v578_v18 = vld [vmem:[#allocation3 + $0x358] sm:$0xff]  ;;  %611 = vmatpush.msrb.mxu1 %v563_v12  ;;  %v91_v23 = vsel %vm85_vm5, %v88_v6, %v90_v16 }
  0x93   :  { %v103_v26 = vand.u32 65535, %v99_v24  ;;  %v104_v27 = vshrl.u32 %v99_v24, 16  ;;  %v577_v24 = vld [vmem:[#allocation3 + $0x350] sm:$0xff]  ;;  %vm195_vm5 = vweird.f32 %v1022_v21 }
  0x94   :  { %v128_v35 = vmul.u32 %v126_v29, %v101_v25  ;;  %v129_v43 = vmul.u32 %v125_v28, %v102_v33  ;;  %v127_v51 = vmul.u32 %v125_v28, %v101_v25  ;;  %v130_v53 = vmul.u32 %v126_v29, %v102_v33  ;;  %631 = vmatpush.msrb.mxu2 %v579_v13  ;;  %v559_v29 = vld [vmem:[#allocation3 + $0x2c0] sm:$0xff] }
  0x95   :  { %v106_v34 = vmul.u32 %v104_v27, %v101_v25  ;;  %v107_v40 = vmul.u32 %v103_v26, %v102_v33  ;;  %v105_v41 = vmul.u32 %v103_v26, %v101_v25  ;;  %v108_v46 = vmul.u32 %v104_v27, %v102_v33  ;;  %612 = vmatpush.msrb.mxu1 %v562_v17  ;;  %v576_v26 = vld [vmem:[#allocation3 + $0x348] sm:$0xff]  ;;  %v558_v33 = vld [vmem:[#allocation3 + $0x2b8] sm:$0xff] }
  0x96   :  { %v131_v44 = vshll.u32 %v128_v35, 16  ;;  %v133_v58 = vshll.u32 %v129_v43, 16  ;;  %v132_v14 = vshrl.u32 %v128_v35, 16  ;;  %v134_v19 = vshrl.u32 %v129_v43, 16  ;;  %632 = vmatpush.msrb.mxu2 %v578_v18 }
  0x97   :  { %v109_v42 = vshll.u32 %v106_v34, 16  ;;  %v111_v54 = vshll.u32 %v107_v40, 16  ;;  %v110_v8 = vshrl.u32 %v106_v34, 16  ;;  %v112_v45 = vshrl.u32 %v107_v40, 16  ;;  %613 = vmatpush.msrb.mxu1 %v561_v4  ;;  %v574_v34 = vld [vmem:[#allocation3 + $0x338] sm:$0xff] }
  0x98   :  { %vm135_vm7 = vc.u32 %v127_v51, %v131_v44  ;;  %v137_v59 = vadd.s32 %v131_v44, %v127_v51  ;;  %v145_v28 = vmul.u32 %v1045_v11, %v91_v23  ;;  %633 = vmatpush.msrb.mxu2 %v577_v24  ;;  %v572_v11 = vld [vmem:[#allocation3 + $0x328] sm:$0xff]  ;;  %v554_v44 = vld [vmem:[#allocation3 + $0x298] sm:$0xff]  ;;  %v569_v51 = vld [vmem:[#allocation3 + $0x310] sm:$0xff] }
  0x99   :  { %vm113_vm6 = vc.u32 %v105_v41, %v109_v42  ;;  %v115_v52 = vadd.s32 %v109_v42, %v105_v41  ;;  %v136_v61 = vsel %vm135_vm7, 1, %v986_v0  ;;  %614 = vmatpush.msrb.mxu1 %v560_v5  ;;  %v555_v41 = vld [vmem:[#allocation3 + $0x2a0] sm:$0xff] }
  0x9a   :  { %v114_v57 = vsel %vm113_vm6, 1, %v986_v0  ;;  %v138_v3 = vadd.s32 %v136_v61, %v130_v53  ;;  %vm139_vm9 = vc.u32 %v137_v59, %v133_v58  ;;  %v141_v22 = vadd.s32 %v137_v59, %v133_v58  ;;  %634 = vmatpush.msrb.mxu2 %v576_v26  ;;  %v571_v42 = vld [vmem:[#allocation3 + $0x320] sm:$0xff]  ;;  %v552_v53 = vld [vmem:[#allocation3 + $0x288] sm:$0xff] }
  0x9b   :  { %v116_v60 = vadd.s32 %v114_v57, %v108_v46  ;;  %vm117_vm8 = vc.u32 %v115_v52, %v111_v54  ;;  %v140_v10 = vsel %vm139_vm9, 1, %v986_v0  ;;  %615 = vmatpush.msrb.mxu1 %v559_v29  ;;  %v570_v46 = vld [vmem:[#allocation3 + $0x318] sm:$0xff]  ;;  %v568_v54 = vld [vmem:[#allocation3 + $0x308] sm:$0xff] }
  0x9c   :  { %v118_v2 = vsel %vm117_vm8, 1, %v986_v0  ;;  %v142_v15 = vadd.s32 %v140_v10, %v138_v3  ;;  %635 = vmatpush.msrb.mxu2 %v575_v31 }
  0x9d   :  { %v120_v9 = vadd.s32 %v118_v2, %v116_v60  ;;  %616 = vmatpush.msrb.mxu1 %v558_v33 }
  0x9e   :  { %v143_v0 = vadd.s32 %v142_v15, %v132_v14  ;;  %636 = vmatpush.msrb.mxu2 %v574_v34 }
  0x9f   :  { %v121_v49 = vadd.s32 %v120_v9, %v110_v8  ;;  %617 = vmatpush.msrb.mxu1 %v557_v36  ;;  %v737_v36 = vld [vmem:[#allocation3 + $0x508] sm:$0xff] }
  0xa0   :  { %v144_v25 = vadd.s32 %v143_v0, %v134_v19  ;;  %637 = vmatpush.msrb.mxu2 %v573_v37  ;;  %v753_v37 = vld [vmem:[#allocation3 + $0x588] sm:$0xff] }
  0xa1   :  { %v122_v20 = vadd.s32 %v121_v49, %v112_v45  ;;  %618 = vmatpush.msrb.mxu1 %v556_v39 }
  0xa2   :  { %v148_v27 = vadd.s32 1, %v144_v25  ;;  %638 = vmatpush.msrb.mxu2 %v572_v11  ;;  %v736_v11 = vld [vmem:[#allocation3 + $0x500] sm:$0xff] }
  0xa3   :  { %vm147_vm10 = vc.u32 %v122_v20, %v141_v22  ;;  %619 = vmatpush.msrb.mxu1 %v555_v41  ;;  %v146_v58 = vadd.s32 %v141_v22, %v122_v20  ;;  %v512_v41 = vld [vmem:[#allocation3 + $0x1f8] sm:$0xff] }
  0xa4   :  { %v149_v32 = vsel %vm147_vm10, %v148_v27, %v144_v25  ;;  %639 = vmatpush.msrb.mxu2 %v571_v42  ;;  %v511_v42 = vld [vmem:[#allocation3 + $0x1f0] sm:$0xff]  ;;  %514 = vmatpush.msra.mxu3 %v512_v41  ;;  %v371_v41 = vld [vmem:[#allocation3 + $0x38] sm:$0xff] }
  0xa5   :  { %v150_v48 = vadd.s32 %v149_v32, %v145_v28  ;;  %620 = vmatpush.msrb.mxu1 %v554_v44  ;;  %v510_v44 = vld [vmem:[#allocation3 + $0x1e8] sm:$0xff] }
  0xa6   :  { %640 = vmatpush.msrb.mxu2 %v570_v46  ;;  %v734_v46 = vld [vmem:[#allocation3 + $0x4f0] sm:$0xff]  ;;  %515 = vmatpush.msra.mxu3 %v511_v42  ;;  %v671_v42 = vld [vmem:[#allocation3 + $0x3a8] sm:$0xff] }
  0xa7   :  { %v151_v35 = vadd.s32 536870912, %v150_v48  ;;  %621 = vmatpush.msrb.mxu1 %v553_v50  ;;  %v733_v50 = vld [vmem:[#allocation3 + $0x4e8] sm:$0xff] }
  0xa8   :  { %641 = vmatpush.msrb.mxu2 %v569_v51  ;;  %v749_v51 = vld [vmem:[#allocation3 + $0x568] sm:$0xff]  ;;  %516 = vmatpush.msra.mxu3 %v510_v44  ;;  %v670_v44 = vld [vmem:[#allocation3 + $0x3a0] sm:$0xff] }
  0xa9   :  { %v152_v38 = vshrl.u32 %v151_v35, 30  ;;  %622 = vmatpush.msrb.mxu1 %v552_v53  ;;  %v732_v53 = vld [vmem:[#allocation3 + $0x4e0] sm:$0xff] }
  0xaa   :  { %642 = vmatpush.msrb.mxu2 %v568_v54  ;;  %v748_v54 = vld [vmem:[#allocation3 + $0x560] sm:$0xff] }
  0xab   :  { %v153_v40 = vshll.u32 %v152_v38, 30  ;;  %v176_v13 = vsub.s32 4, %v152_v38 }
  0xad   :  { %v154_v43 = vsub.s32 %v150_v48, %v153_v40  ;;  %v177_v45 = vsel %vm54_vm13, %v176_v13, %v152_v38  ;;  %v752_v40 = vld [vmem:[#allocation3 + $0x580] sm:$0xff]  ;;  %v742_v13 = vld [vmem:[#allocation3 + $0x530] sm:$0xff] }
  0xae   :  { %v179_v18 = vsel %vm53_vm14, 0, %v177_v45  ;;  %v724_v45 = vld [vmem:[#allocation3 + $0x4a0] sm:$0xff] }
  0xaf   :  { %vm155_vm11 = vcmp.lt.s32.totalorder %v154_v43, 0  ;;  %v156_v47 = vsub.s32 0, %v154_v43  ;;  %v196_v23 = vadd.s32 3, %v179_v18  ;;  %v352_v5 = vand.u32 3, %v179_v18  ;;  %v739_v18 = vld [vmem:[#allocation3 + $0x518] sm:$0xff] }
  0xb1   :  { %v157_v52 = vsel %vm155_vm11, %v156_v47, %v154_v43  ;;  %v197_v26 = vand.u32 3, %v196_v23  ;;  %vm353_vm15 = vcmp.lt.s32.totalorder %v352_v5, 2  ;;  %vm354_vm0 = vcmp.eq.s32.totalorder %v352_v5, 0  ;;  %v750_v47 = vld [vmem:[#allocation3 + $0x570] sm:$0xff]  ;;  %v498_v23 = vld [vmem:[#allocation3 + $0x188] sm:$0xff] }
  0xb2   :  { %v158_v55 = vclz %v157_v52  ;;  %vm357_vm4 = vcmp.eq.s32.totalorder %v352_v5, 2  ;;  %v509_v52 = vld [vmem:[#allocation3 + $0x1e0] sm:$0xff]  ;;  %v379_v5 = vld [vmem:[#allocation3 + $0x78] sm:$0xff] }
  0xb3   :  { %vm198_vm1 = vcmp.lt.s32.totalorder %v197_v26, 2  ;;  %vm199_vm2 = vcmp.eq.s32.totalorder %v197_v26, 0  ;;  %vm202_vm3 = vcmp.eq.s32.totalorder %v197_v26, 2  ;;  %517 = vmatpush.msra.mxu3 %v509_v52  ;;  %v679_v26 = vld [vmem:[#allocation3 + $0x3e8] sm:$0xff]  ;;  %416 = vmatpush.msra.mxu0 %v379_v5  ;;  %v668_v52 = vld [vmem:[#allocation3 + $0x390] sm:$0xff] }
  0xb4   :  { %v894_v56 = vadd.s32 4294967294, %v158_v55  ;;  %v508_v55 = vld [vmem:[#allocation3 + $0x1d8] sm:$0xff] }
  0xb5   :  { %518 = vmatpush.msra.mxu3 %v508_v55  ;;  %v1109_v55 = vld [vmem:[#allocation3 + $0x408] sm:$0xff] }
  0xb6   :  { %vm895_vm12 = vcmp.lt.s32.totalorder %v894_v56, 0 }
  0xb7   :  { %v161_v57 = vsel %vm895_vm12, 0, %v894_v56  ;;  %v731_v56 = vld [vmem:[#allocation3 + $0x4d8] sm:$0xff] }
  0xb8   :  { %v162_v59 = vsub.s32 32, %v161_v57  ;;  %v166_v60 = vsub.s32 4294967266, %v161_v57  ;;  %v163_v61 = vshll.u32 %v154_v43, %v161_v57  ;;  %v735_v43 = vld [vmem:[#allocation3 + $0x4f8] sm:$0xff] }
  0xb9   :  { %v747_v57 = vld [vmem:[#allocation3 + $0x558] sm:$0xff] }
  0xba   :  { %v164_v62 = vshrl.u32 %v146_v58, %v162_v59  ;;  %v167_v63 = vadd.s32 127, %v166_v60  ;;  %v507_v58 = vld [vmem:[#allocation3 + $0x1d0] sm:$0xff] }
  0xbb   :  { %v730_v59 = vld [vmem:[#allocation3 + $0x4d0] sm:$0xff]  ;;  %519 = vmatpush.msra.mxu3 %v507_v58 }
  0xbc   :  { %v165_v1 = vor.u32 %v164_v62, %v163_v61  ;;  %v168_v2 = vshll.u32 %v167_v63, 23  ;;  %v746_v60 = vld [vmem:[#allocation3 + $0x550] sm:$0xff]  ;;  %v506_v61 = vld [vmem:[#allocation3 + $0x1c8] sm:$0xff] }
  0xbd   :  { %v729_v62 = vld [vmem:[#allocation3 + $0x4c8] sm:$0xff]  ;;  %520 = vmatpush.msra.mxu3 %v506_v61  ;;  %v606_v61 = vperm.slane %v1109_v55, 1 }
  0xbe   :  { %v169_v3 = vor.u32 4788187, %v168_v2  ;;  %v172_v8 = vcvt.s32.f32 %v165_v1  ;;  %v745_v63 = vld [vmem:[#allocation3 + $0x548] sm:$0xff]  ;;  %v505_v1 = vld [vmem:[#allocation3 + $0x1c0] sm:$0xff] }
  0xbf   :  { %v728_v2 = vld [vmem:[#allocation3 + $0x4c0] sm:$0xff]  ;;  %521 = vmatpush.msra.mxu3 %v505_v1 }
  0xc0   :  { %v170_v7 = vand.u32 2147483647, %v169_v3  ;;  %v744_v3 = vld [vmem:[#allocation3 + $0x540] sm:$0xff] }
  0xc1   :  { %v364_v1 = vld [vmem:[#allocation3] sm:$0xff] }
  0xc2   :  { %v173_v9 = vmul.f32 %v172_v8, %v170_v7  ;;  %v504_v7 = vld [vmem:[#allocation3 + $0x1b8] sm:$0xff] }
  0xc3   :  { %v727_v8 = vld [vmem:[#allocation3 + $0x4b8] sm:$0xff]  ;;  %522 = vmatpush.msra.mxu3 %v504_v7 }
  0xc4   :  { %v174_v10 = vxor.u32 2147483648, %v173_v9 }
  0xc6   :  { %v175_v12 = vsel %vm54_vm13, %v174_v10, %v173_v9  ;;  %v743_v9 = vld [vmem:[#allocation3 + $0x538] sm:$0xff]  ;;  %v503_v10 = vld [vmem:[#allocation3 + $0x1b0] sm:$0xff] }
  0xc7   :  { %v178_v14 = vsel %vm53_vm14, %v1022_v21, %v175_v12  ;;  %v751_v21 = vld [vmem:[#allocation3 + $0x578] sm:$0xff]  ;;  %v726_v12 = vld [vmem:[#allocation3 + $0x4b0] sm:$0xff]  ;;  %523 = vmatpush.msra.mxu3 %v503_v10 }
  0xc8   :  { %v180_v15 = vmul.f32 %v178_v14, %v178_v14 }
  0xca   :  { %v181_v6 = vmul.f32 -0.001358992, %v180_v15  ;;  %v188_v16 = vmul.f32 -0.00019511016, %v180_v15 }
  0xcc   :  { %v182_v49 = vadd.f32 0.041655596, %v181_v6  ;;  %v189_v17 = vadd.f32 0.008332121, %v188_v16  ;;  %v741_v6 = vld [vmem:[#allocation3 + $0x528] sm:$0xff]  ;;  %v501_v16 = vld [vmem:[#allocation3 + $0x1a0] sm:$0xff] }
  0xce   :  { %v183_v19 = vmul.f32 %v182_v49, %v180_v15  ;;  %v190_v0 = vmul.f32 %v189_v17, %v180_v15  ;;  %v740_v49 = vld [vmem:[#allocation3 + $0x520] sm:$0xff]  ;;  %v723_v17 = vld [vmem:[#allocation3 + $0x498] sm:$0xff] }
  0xd0   :  { %v184_v20 = vadd.f32 -0.4999988, %v183_v19  ;;  %v191_v22 = vadd.f32 -0.16666654, %v190_v0  ;;  %v722_v19 = vld [vmem:[#allocation3 + $0x490] sm:$0xff] }
  0xd1   :  { %v738_v0 = vld [vmem:[#allocation3 + $0x510] sm:$0xff] }
  0xd2   :  { %v185_v4 = vmul.f32 %v184_v20, %v180_v15  ;;  %v192_v24 = vmul.f32 %v191_v22, %v180_v15  ;;  %v725_v15 = vld [vmem:[#allocation3 + $0x4a8] sm:$0xff]  ;;  %v500_v20 = vld [vmem:[#allocation3 + $0x198] sm:$0xff]  ;;  %v499_v22 = vld [vmem:[#allocation3 + $0x190] sm:$0xff] }
  0xd4   :  { %v186_v25 = vadd.f32 1.0, %v185_v4  ;;  %v193_v30 = vadd.f32 1.0, %v192_v24  ;;  %v497_v4 = vld [vmem:[#allocation3 + $0x180] sm:$0xff] }
  0xd5   :  { %v682_v24 = vld [vmem:[#allocation3 + $0x400] sm:$0xff] }
  0xd6   :  { %v194_v27 = vmul.f32 %v193_v30, %v178_v14  ;;  %v203_v28 = vxor.u32 2147483648, %v186_v25  ;;  %v502_v14 = vld [vmem:[#allocation3 + $0x1a8] sm:$0xff]  ;;  %v680_v30 = vld [vmem:[#allocation3 + $0x3f0] sm:$0xff] }
  0xd7   :  { %524 = vmatpush.msra.mxu3 %v502_v14 }
  0xd8   :  { %v200_v29 = vxor.u32 2147483648, %v194_v27  ;;  %v204_v32 = vsel %vm202_vm3, %v203_v28, %v194_v27  ;;  %v359_v33 = vsel %vm357_vm4, %v203_v28, %v194_v27  ;;  %v378_v27 = vld [vmem:[#allocation3 + $0x70] sm:$0xff]  ;;  %v678_v28 = vld [vmem:[#allocation3 + $0x3e0] sm:$0xff] }
  0xd9   :  { %525 = vmatpush.msra.mxu3 %v501_v16  ;;  %417 = vmatpush.msra.mxu0 %v378_v27  ;;  %v852_v27 = vld [vmem:[#allocation3 + $0x608] sm:$0xff] }
  0xda   :  { %v201_v31 = vsel %vm199_vm2, %v186_v25, %v200_v29  ;;  %v356_v48 = vsel %vm354_vm0, %v186_v25, %v200_v29  ;;  %v681_v25 = vld [vmem:[#allocation3 + $0x3f8] sm:$0xff]  ;;  %v377_v29 = vld [vmem:[#allocation3 + $0x68] sm:$0xff] }
  0xdb   :  { %v205_v34 = vsel %vm198_vm1, %v201_v31, %v204_v32  ;;  %v360_v35 = vsel %vm353_vm15, %v356_v48, %v359_v33  ;;  %526 = vmatpush.msra.mxu3 %v500_v20  ;;  %v677_v31 = vld [vmem:[#allocation3 + $0x3d8] sm:$0xff]  ;;  %418 = vmatpush.msra.mxu0 %v377_v29  ;;  %v376_v32 = vld [vmem:[#allocation3 + $0x60] sm:$0xff]  ;;  %v676_v48 = vld [vmem:[#allocation3 + $0x3d0] sm:$0xff] }
  0xdc   :  { %v1096_v38 = vsel %vm195_vm5, nan, %v205_v34  ;;  %v1098_v39 = vsel %vm195_vm5, nan, %v360_v35  ;;  %v375_v33 = vld [vmem:[#allocation3 + $0x58] sm:$0xff]  ;;  %v675_v34 = vld [vmem:[#allocation3 + $0x3c8] sm:$0xff]  ;;  %v374_v35 = vld [vmem:[#allocation3 + $0x50] sm:$0xff] }
  0xdd   :  { %453 = vmatmul.f32.vlgmr.msra.gmra.mxu1 %v1096_v38  ;;  %473 = vmatmul.f32.vlgmr.msra.gmra.mxu2 %v1098_v39 }
  0xde   :  { %777 = vmatpush.msra.mxu1 %v737_v36  ;;  %797 = vmatpush.msra.mxu2 %v753_v37  ;;  %v674_v36 = vld [vmem:[#allocation3 + $0x3c0] sm:$0xff]  ;;  %v373_v37 = vld [vmem:[#allocation3 + $0x48] sm:$0xff] }
  0xdf   :  { %527 = vmatpush.msra.mxu3 %v499_v22  ;;  %419 = vmatpush.msra.mxu0 %v376_v32 }
  0xe0   :  { %778 = vmatpush.msra.mxu1 %v736_v11  ;;  %798 = vmatpush.msra.mxu2 %v752_v40  ;;  %v672_v11 = vld [vmem:[#allocation3 + $0x3b0] sm:$0xff]  ;;  %v1106_v40 = vld [vmem:[#allocation3 + $0x200] sm:$0xff] }
  0xe1   :  { %528 = vmatpush.msra.mxu3 %v498_v23  ;;  %420 = vmatpush.msra.mxu0 %v375_v33  ;;  %v851_v33 = vld [vmem:[#allocation3 + $0x600] sm:$0xff] }
  0xe2   :  { %779 = vmatpush.msra.mxu1 %v735_v43  ;;  %799 = vmatpush.msra.mxu2 %v751_v21  ;;  %v370_v21 = vld [vmem:[#allocation3 + $0x30] sm:$0xff] }
  0xe3   :  { %529 = vmatpush.msra.mxu3 %v497_v4  ;;  %421 = vmatpush.msra.mxu0 %v374_v35  ;;  %v550_v35 = vld [vmem:[#allocation3 + $0x278] sm:$0xff] }
  0xe4   :  { %780 = vmatpush.msra.mxu1 %v734_v46  ;;  %800 = vmatpush.msra.mxu2 %v750_v47  ;;  %v436_v46 = vperm.slane %v1106_v40, 1  ;;  %v369_v47 = vld [vmem:[#allocation3 + $0x28] sm:$0xff] }
  0xe5   :  { %623 = vmatmul.f32.vlgmr.msrb.gmra.mxu1 %v1096_v38  ;;  %643 = vmatmul.f32.vlgmr.msrb.gmra.mxu2 %v1098_v39 }
  0xe6   :  { %781 = vmatpush.msra.mxu1 %v733_v50  ;;  %801 = vmatpush.msra.mxu2 %v749_v51  ;;  %v669_v50 = vld [vmem:[#allocation3 + $0x398] sm:$0xff]  ;;  %v368_v51 = vld [vmem:[#allocation3 + $0x20] sm:$0xff] }
  0xe7   :  { %684 = vmatpush.msrb.mxu3 %v682_v24  ;;  %422 = vmatpush.msra.mxu0 %v373_v37 }
  0xe8   :  { %782 = vmatpush.msra.mxu1 %v732_v53  ;;  %802 = vmatpush.msra.mxu2 %v748_v54 }
  0xe9   :  { %685 = vmatpush.msrb.mxu3 %v681_v25 }
  0xea   :  { %783 = vmatpush.msra.mxu1 %v731_v56  ;;  %803 = vmatpush.msra.mxu2 %v747_v57  ;;  %v367_v56 = vld [vmem:[#allocation3 + $0x18] sm:$0xff]  ;;  %v667_v57 = vld [vmem:[#allocation3 + $0x388] sm:$0xff] }
  0xeb   :  { %686 = vmatpush.msrb.mxu3 %v680_v30 }
  0xec   :  { %784 = vmatpush.msra.mxu1 %v730_v59  ;;  %804 = vmatpush.msra.mxu2 %v746_v60  ;;  %v366_v59 = vld [vmem:[#allocation3 + $0x10] sm:$0xff] }
  0xed   :  { %687 = vmatpush.msrb.mxu3 %v679_v26 }
  0xee   :  { %785 = vmatpush.msra.mxu1 %v729_v62  ;;  %805 = vmatpush.msra.mxu2 %v745_v63  ;;  %v365_v63 = vld [vmem:[#allocation3 + $0x8] sm:$0xff] }
  0xef   :  { %688 = vmatpush.msrb.mxu3 %v678_v28 }
  0xf0   :  { %786 = vmatpush.msra.mxu1 %v728_v2  ;;  %806 = vmatpush.msra.mxu2 %v744_v3  ;;  %v363_v3 = vld [vmem:[%s1131_s0] sm:$0xff]  ;;  %s994_s0 = smov [#allocation6]  }
  0xf1   :  { %689 = vmatpush.msrb.mxu3 %v677_v31  ;;  %s881_s21 = sshll.u32 %s994_s0, 4  ;;  %s882_s21 = int_to_ptr.vmem [resolvable:$true] %s881_s21 }
  0xf2   :  { %787 = vmatpush.msra.mxu1 %v727_v8  ;;  %807 = vmatpush.msra.mxu2 %v743_v9 }
  0xf3   :  { %690 = vmatpush.msrb.mxu3 %v676_v48 }
  0xf4   :  { %788 = vmatpush.msra.mxu1 %v726_v12  ;;  %808 = vmatpush.msra.mxu2 %v742_v13 }
  0xf5   :  { %691 = vmatpush.msrb.mxu3 %v675_v34  ;;  %v551_v34 = vld [vmem:[#allocation3 + $0x280] sm:$0xff] }
  0xf6   :  { %789 = vmatpush.msra.mxu1 %v725_v15  ;;  %809 = vmatpush.msra.mxu2 %v741_v6 }
  0xf7   :  { %692 = vmatpush.msrb.mxu3 %v674_v36 }
  0xf8   :  { %790 = vmatpush.msra.mxu1 %v724_v45  ;;  %810 = vmatpush.msra.mxu2 %v740_v49  ;;  %v1115_v45 = vld [vmem:[#allocation3 + $0x610] sm:$0xff] }
  0xfa   :  { %791 = vmatpush.msra.mxu1 %v723_v17  ;;  %811 = vmatpush.msra.mxu2 %v739_v18 }
  0xfc   :  { %792 = vmatpush.msra.mxu1 %v722_v19  ;;  %812 = vmatpush.msra.mxu2 %v738_v0  ;;  %v776_v19 = vperm.slane %v1115_v45, 1 }
  0xfd   :  { %793 = vmatmul.f32.vlgmr.msra.gmra.mxu1 %v1096_v38  ;;  %813 = vmatmul.f32.vlgmr.msra.gmra.mxu2 %v1098_v39  ;;  %v673_v38 = vld [vmem:[#allocation3 + $0x3b8] sm:$0xff]  ;;  %v372_v39 = vld [vmem:[#allocation3 + $0x40] sm:$0xff] }
  0xfe   :  { %693 = vmatpush.msrb.mxu3 %v673_v38  ;;  %423 = vmatpush.msra.mxu0 %v372_v39  ;;  %v850_v38 = vld [vmem:[#allocation3 + $0x5f8] sm:$0xff]  ;;  %v549_v39 = vld [vmem:[#allocation3 + $0x270] sm:$0xff] }
 0x100   :  { %694 = vmatpush.msrb.mxu3 %v672_v11  ;;  %424 = vmatpush.msra.mxu0 %v371_v41 }
 0x102   :  { %695 = vmatpush.msrb.mxu3 %v671_v42  ;;  %425 = vmatpush.msra.mxu0 %v370_v21  ;;  %v849_v42 = vld [vmem:[#allocation3 + $0x5f0] sm:$0xff] }
 0x104   :  { %696 = vmatpush.msrb.mxu3 %v670_v44  ;;  %426 = vmatpush.msra.mxu0 %v369_v47  ;;  %v547_v47 = vld [vmem:[#allocation3 + $0x260] sm:$0xff] }
 0x106   :  { %697 = vmatpush.msrb.mxu3 %v669_v50  ;;  %427 = vmatpush.msra.mxu0 %v368_v51  ;;  %v847_v50 = vld [vmem:[#allocation3 + $0x5e0] sm:$0xff]  ;;  %v546_v51 = vld [vmem:[#allocation3 + $0x258] sm:$0xff] }
 0x108   :  { %698 = vmatpush.msrb.mxu3 %v668_v52  ;;  %428 = vmatpush.msra.mxu0 %v367_v56 }
 0x10a   :  { %699 = vmatpush.msrb.mxu3 %v667_v57  ;;  %429 = vmatpush.msra.mxu0 %v366_v59  ;;  %v845_v57 = vld [vmem:[#allocation3 + $0x5d0] sm:$0xff]  ;;  %v844_v59 = vld [vmem:[#allocation3 + $0x5c8] sm:$0xff] }
 0x10c   :  { %430 = vmatpush.msra.mxu0 %v365_v63  ;;  %v842_v63 = vld [vmem:[#allocation3 + $0x5b8] sm:$0xff] }
 0x10e   :  { %431 = vmatpush.msra.mxu0 %v364_v1  ;;  %v541_v1 = vld [vmem:[#allocation3 + $0x230] sm:$0xff] }
 0x10f   :  { %432 = vmatmul.f32.vlgmr.msra.gmra.mxu0 %v363_v3 }
 0x110   :  { %586 = vmatpush.msrb.mxu0 %v551_v34  ;;  %v717_v34 = vld [vmem:[#allocation3 + $0x468] sm:$0xff] }
 0x112   :  { %587 = vmatpush.msrb.mxu0 %v550_v35  ;;  %v716_v35 = vld [vmem:[#allocation3 + $0x460] sm:$0xff] }
 0x114   :  { %588 = vmatpush.msrb.mxu0 %v549_v39  ;;  %v711_v39 = vld [vmem:[#allocation3 + $0x438] sm:$0xff] }
 0x15a   :  { %v454_v43 = vpop.f32.mrf.mxu1 }
 0x15b   :  { %v455_v53 = vadd.f32 %v454_v43, %v436_v46  ;;  %v548_v43 = vld [vmem:[#allocation3 + $0x268] sm:$0xff] }
 0x15c   :  { %v848_v46 = vld [vmem:[#allocation3 + $0x5e8] sm:$0xff]  ;;  %589 = vmatpush.msrb.mxu0 %v548_v43  ;;  %v707_v43 = vld [vmem:[#allocation3 + $0x418] sm:$0xff] }
 0x15e   :  { %590 = vmatpush.msrb.mxu0 %v547_v47 }
 0x160   :  { %v474_v54 = vpop.f32.mrf.mxu2  ;;  %591 = vmatpush.msrb.mxu0 %v546_v51 }
 0x161   :  { %v475_v58 = vadd.f32 %v474_v54, %v455_v53  ;;  %v846_v53 = vld [vmem:[#allocation3 + $0x5d8] sm:$0xff]  ;;  %v545_v54 = vld [vmem:[#allocation3 + $0x250] sm:$0xff] }
 0x162   :  { %v624_v62 = vpop.f32.mrf.mxu1  ;;  %592 = vmatpush.msrb.mxu0 %v545_v54 }
 0x163   :  { %v899_v60 = vmul.f32 -1.442695, %v475_v58  ;;  %v625_v2 = vadd.f32 %v624_v62, %v606_v61  ;;  %v843_v61 = vld [vmem:[#allocation3 + $0x5c0] sm:$0xff]  ;;  %v542_v62 = vld [vmem:[#allocation3 + $0x238] sm:$0xff] }
 0x165   :  { %919 = vpow2.f32 %v899_v60  ;;  %v543_v60 = vld [vmem:[#allocation3 + $0x240] sm:$0xff] }
 0x168   :  { %v644_v7 = vpop.f32.mrf.mxu2 }
 0x169   :  { %v645_v8 = vadd.f32 %v644_v7, %v625_v2  ;;  %v841_v7 = vld [vmem:[#allocation3 + $0x5b0] sm:$0xff] }
 0x16b   :  { %v920_v9 = vpop.eup %919  ;;  %v900_v10 = vmul.f32 -1.442695, %v645_v8 }
 0x16c   :  { %v480_v12 = vadd.f32 1.0, %v920_v9 }
 0x16d   :  { %921 = vpow2.f32 %v900_v10  ;;  %v840_v10 = vld [vmem:[#allocation3 + $0x5a8] sm:$0xff] }
 0x16e   :  { %923 = vrcp.f32 %v480_v12  ;;  %v492_v49 = vand.u32 2147483648, %v480_v12  ;;  %v490_v18 = vand.u32 2147483647, %v480_v12  ;;  %vm486_vm7 = vweird.f32 %v480_v12 }
 0x170   :  { %v493_v23 = vor.u32 1.1754944e-38, %v492_v49  ;;  %vm491_vm9 = vcmp.eq.f32.partialorder %v490_v18, 8.507059e+37  ;;  %v837_v18 = vld [vmem:[#allocation3 + $0x590] sm:$0xff] }
 0x173   :  { %v922_v13 = vpop.eup %921 }
 0x174   :  { %v924_v14 = vpop.eup %923  ;;  %v650_v15 = vadd.f32 1.0, %v922_v13 }
 0x175   :  { %v482_v6 = vmul.f32 %v924_v14, %v480_v12  ;;  %vm487_vm6 = vweird.f32 %v924_v14 }
 0x176   :  { %925 = vrcp.f32 %v650_v15  ;;  %vm488_vm8 = vmor %vm486_vm7, %vm487_vm6  ;;  %v662_v28 = vand.u32 2147483648, %v650_v15  ;;  %v660_v32 = vand.u32 2147483647, %v650_v15  ;;  %vm656_vm11 = vweird.f32 %v650_v15 }
 0x177   :  { %v483_v16 = vsub.f32 1.0, %v482_v6 }
 0x178   :  { %v663_v11 = vor.u32 1.1754944e-38, %v662_v28  ;;  %vm661_vm13 = vcmp.eq.f32.partialorder %v660_v32, 8.507059e+37  ;;  %v721_v28 = vld [vmem:[#allocation3 + $0x488] sm:$0xff]  ;;  %v719_v32 = vld [vmem:[#allocation3 + $0x478] sm:$0xff] }
 0x179   :  { %v484_v17 = vmul.f32 %v924_v14, %v483_v16  ;;  %v838_v16 = vld [vmem:[#allocation3 + $0x598] sm:$0xff] }
 0x17a   :  { %v794_v22 = vpop.f32.mrf.mxu1 }
 0x17b   :  { %v485_v0 = vadd.f32 %v924_v14, %v484_v17  ;;  %v795_v5 = vadd.f32 %v794_v22, %v776_v19  ;;  %v538_v22 = vld [vmem:[#allocation3 + $0x218] sm:$0xff] }
 0x17c   :  { %v926_v20 = vpop.eup %925 }
 0x17d   :  { %v652_v4 = vmul.f32 %v926_v20, %v650_v15  ;;  %v489_v24 = vsel %vm488_vm8, %v924_v14, %v485_v0  ;;  %vm657_vm10 = vweird.f32 %v926_v20  ;;  %v839_v15 = vld [vmem:[#allocation3 + $0x5a0] sm:$0xff] }
 0x17e   :  { %v494_v25 = vsel %vm491_vm9, %v493_v23, %v489_v24  ;;  %vm658_vm12 = vmor %vm656_vm11, %vm657_vm10  ;;  %v537_v23 = vld [vmem:[#allocation3 + $0x210] sm:$0xff]  ;;  %v415_v24 = vperm.slane %v1106_v40, 0 }
 0x17f   :  { %v653_v30 = vsub.f32 1.0, %v652_v4  ;;  %v496_v26 = vmul.f32 %v494_v25, %v475_v58  ;;  %v544_v58 = vld [vmem:[#allocation3 + $0x248] sm:$0xff] }
 0x180   :  { %v814_v29 = vpop.f32.mrf.mxu2  ;;  %593 = vmatpush.msrb.mxu0 %v544_v58  ;;  %v536_v4 = vld [vmem:[#allocation3 + $0x208] sm:$0xff] }
 0x181   :  { %v654_v31 = vmul.f32 %v926_v20, %v653_v30  ;;  %v1118_v48 = vadd.f32 %v814_v29, %v795_v5  ;;  %530 = vmatmul.f32.vlgmr.msra.gmra.mxu3 %v496_v26  ;;  %v513_v30 = vperm.slane %v1106_v40, 2  ;;  %v720_v29 = vld [vmem:[#allocation3 + $0x480] sm:$0xff]  ;;  %v714_v40 = vld [vmem:[#allocation3 + $0x450] sm:$0xff] }
 0x182   :  { %854 = vmatpush.msra.mxu3 %v852_v27  ;;  %594 = vmatpush.msrb.mxu0 %v543_v60 }
 0x183   :  { %v655_v36 = vadd.f32 %v926_v20, %v654_v31  ;;  %v901_v37 = vmul.f32 -1.442695, %v1118_v48 }
 0x184   :  { %855 = vmatpush.msra.mxu3 %v851_v33  ;;  %595 = vmatpush.msrb.mxu0 %v542_v62  ;;  %v718_v33 = vld [vmem:[#allocation3 + $0x470] sm:$0xff] }
 0x185   :  { %v659_v41 = vsel %vm658_vm12, %v926_v20, %v655_v36  ;;  %927 = vpow2.f32 %v901_v37  ;;  %v539_v20 = vld [vmem:[#allocation3 + $0x220] sm:$0xff]  ;;  %v715_v36 = vld [vmem:[#allocation3 + $0x458] sm:$0xff]  ;;  %v713_v37 = vld [vmem:[#allocation3 + $0x448] sm:$0xff] }
 0x186   :  { %v664_v21 = vsel %vm661_vm13, %v663_v11, %v659_v41  ;;  %856 = vmatpush.msra.mxu3 %v850_v38  ;;  %596 = vmatpush.msrb.mxu0 %v541_v1  ;;  %v712_v38 = vld [vmem:[#allocation3 + $0x440] sm:$0xff]  ;;  %v710_v11 = vld [vmem:[#allocation3 + $0x430] sm:$0xff]  ;;  %v709_v41 = vld [vmem:[#allocation3 + $0x428] sm:$0xff] }
 0x187   :  { %v666_v44 = vmul.f32 %v664_v21, %v645_v8  ;;  %v540_v8 = vld [vmem:[#allocation3 + $0x228] sm:$0xff]  ;;  %v706_v21 = vld [vmem:[#allocation3 + $0x410] sm:$0xff] }
 0x188   :  { %857 = vmatpush.msra.mxu3 %v849_v42  ;;  %597 = vmatpush.msrb.mxu0 %v540_v8  ;;  %v708_v42 = vld [vmem:[#allocation3 + $0x420] sm:$0xff] }
 0x189   :  { %700 = vmatmul.f32.vlgmr.msrb.gmra.mxu3 %v666_v44  ;;  %v683_v44 = vperm.slane %v1109_v55, 2 }
 0x18a   :  { %858 = vmatpush.msra.mxu3 %v848_v46  ;;  %598 = vmatpush.msrb.mxu0 %v539_v20  ;;  %v585_v46 = vperm.slane %v1109_v55, 0 }
 0x18b   :  { %v928_v52 = vpop.eup %927 }
 0x18c   :  { %v820_v56 = vadd.f32 1.0, %v928_v52  ;;  %859 = vmatpush.msra.mxu3 %v847_v50  ;;  %599 = vmatpush.msrb.mxu0 %v538_v22  ;;  %v433_v25 = vpop.f32.mrf.mxu0 }
 0x18d   :  { %v434_v5 = vadd.f32 %v433_v25, %v415_v24 }
 0x18e   :  { %929 = vrcp.f32 %v820_v56  ;;  %860 = vmatpush.msra.mxu3 %v846_v53  ;;  %v832_v12 = vand.u32 2147483648, %v820_v56  ;;  %v830_v14 = vand.u32 2147483647, %v820_v56  ;;  %vm826_vm15 = vweird.f32 %v820_v56  ;;  %600 = vmatpush.msrb.mxu0 %v537_v23 }
 0x190   :  { %861 = vmatpush.msra.mxu3 %v845_v57  ;;  %v833_v49 = vor.u32 1.1754944e-38, %v832_v12  ;;  %vm831_vm1 = vcmp.eq.f32.partialorder %v830_v14, 8.507059e+37  ;;  %601 = vmatpush.msrb.mxu0 %v536_v4  ;;  %v755_v57 = vperm.slane %v1115_v45, 0 }
 0x192   :  { %862 = vmatpush.msra.mxu3 %v844_v59  ;;  %756 = vmatpush.msra.mxu0 %v721_v28 }
 0x194   :  { %v930_v2 = vpop.eup %929  ;;  %863 = vmatpush.msra.mxu3 %v843_v61  ;;  %757 = vmatpush.msra.mxu0 %v720_v29 }
 0x195   :  { %v822_v3 = vmul.f32 %v930_v2, %v820_v56  ;;  %vm827_vm14 = vweird.f32 %v930_v2  ;;  %v853_v56 = vperm.slane %v1115_v45, 2 }
 0x196   :  { %864 = vmatpush.msra.mxu3 %v842_v63  ;;  %vm828_vm0 = vmor %vm826_vm15, %vm827_vm14  ;;  %758 = vmatpush.msra.mxu0 %v719_v32 }
 0x197   :  { %v823_v9 = vsub.f32 1.0, %v822_v3 }
 0x198   :  { %865 = vmatpush.msra.mxu3 %v841_v7  ;;  %759 = vmatpush.msra.mxu0 %v718_v33 }
 0x199   :  { %v824_v13 = vmul.f32 %v930_v2, %v823_v9 }
 0x19a   :  { %866 = vmatpush.msra.mxu3 %v840_v10  ;;  %760 = vmatpush.msra.mxu0 %v717_v34 }
 0x19b   :  { %v825_v6 = vadd.f32 %v930_v2, %v824_v13 }
 0x19c   :  { %867 = vmatpush.msra.mxu3 %v839_v15  ;;  %761 = vmatpush.msra.mxu0 %v716_v35 }
 0x19d   :  { %v829_v17 = vsel %vm828_vm0, %v930_v2, %v825_v6 }
 0x19e   :  { %v834_v19 = vsel %vm831_vm1, %v833_v49, %v829_v17  ;;  %868 = vmatpush.msra.mxu3 %v838_v16  ;;  %762 = vmatpush.msra.mxu0 %v715_v36 }
 0x19f   :  { %v836_v0 = vmul.f32 %v834_v19, %v1118_v48 }
 0x1a0   :  { %869 = vmatpush.msra.mxu3 %v837_v18  ;;  %763 = vmatpush.msra.mxu0 %v714_v40 }
 0x1a1   :  { %870 = vmatmul.f32.vlgmr.msra.gmra.mxu3 %v836_v0 }
 0x1a2   :  { %764 = vmatpush.msra.mxu0 %v713_v37 }
 0x1a4   :  { %765 = vmatpush.msra.mxu0 %v712_v38 }
 0x1a6   :  { %766 = vmatpush.msra.mxu0 %v711_v39 }
 0x1a8   :  { %767 = vmatpush.msra.mxu0 %v710_v11 }
 0x1aa   :  { %768 = vmatpush.msra.mxu0 %v709_v41 }
 0x1ac   :  { %769 = vmatpush.msra.mxu0 %v708_v42 }
 0x1ae   :  { %770 = vmatpush.msra.mxu0 %v707_v43 }
 0x1b0   :  { %771 = vmatpush.msra.mxu0 %v706_v21 }
 0x204   :  { %v531_v26 = vpop.f32.mrf.mxu3 }
 0x205   :  { %v532_v27 = vadd.f32 %v531_v26, %v513_v30 }
 0x207   :  { %v534_v31 = vmul.f32 %v532_v27, %v434_v5 }
 0x209   :  { %v535_v48 = vmax.f32 %v534_v31, 0.0 }
 0x20b   :  { %602 = vmatmul.f32.vlgmr.msrb.gmra.mxu0 %v535_v48 }
 0x20c   :  { %v701_v47 = vpop.f32.mrf.mxu3 }
 0x20d   :  { %v702_v51 = vadd.f32 %v701_v47, %v683_v44 }
 0x224   :  { %v871_v58 = vpop.f32.mrf.mxu3 }
 0x225   :  { %v872_v55 = vadd.f32 %v871_v58, %v853_v56 }
 0x288   :  { %v603_v50 = vpop.f32.mrf.mxu0 }
 0x289   :  { %v604_v52 = vadd.f32 %v603_v50, %v585_v46 }
 0x28b   :  { %v704_v53 = vmul.f32 %v702_v51, %v604_v52 }
 0x28d   :  { %v705_v54 = vmax.f32 %v704_v53, 0.0 }
 0x28f   :  { %772 = vmatmul.f32.vlgmr.msra.gmra.mxu0 %v705_v54 }
 0x30c   :  { %v773_v59 = vpop.f32.mrf.mxu0 }
 0x30d   :  { %v774_v60 = vadd.f32 %v773_v59, %v755_v57 }
 0x30f   :  { %v874_v61 = vmul.f32 %v872_v55, %v774_v60 }
 0x311   :  { %875 = vst [vmem:[#allocation6] sm:$0xff] %v874_v61 }
 0x312   :  { %886 = dma.vmem_to_hbm [thread:$0]  %s882_s21, 128, %s884_s24, [#allocation5]  }
 0x313   :  { %981 = dma.done.wait [#allocation5], 128  }
 0x314   :  { %982 = vsyncadd [#allocation5], 4294967168 }
 0x315   :  { %891 = vsyncpa [#allocation4], 1 }
 0x316   :  { %892 = vsyncpa [#allocation5], 1 }

</bundles_post_ra>
